<compile_context>
chip_gen: v7x
topology: tpu7x:2x2x1
jax: 0.10.0
libtpu: 0.0.40
codegen_flags: <defaults>
</compile_context>

<pallas_src>
import functools

import jax
import jax.numpy as jnp
from jax.experimental import pallas as pl
from jax.experimental.pallas import tpu as pltpu


# ----------------------------- fused Pallas kernel ------------------------------

def edge_embedder_kernel(src_ref, dst_ref, x_ref, w1_ref, b1_ref, w2_ref, b2_ref, o_ref):
    n = x_ref.shape[0]          # number of nodes
    e_p = dst_ref.shape[1]      # padded edge count (padded entries hold node id == n)

    # ---- dense adjacency via one-hot matmul (duplicates accumulate, like scatter_add) ----
    iota_en = jax.lax.broadcasted_iota(jnp.int32, (e_p, n), 1)          # node ids on lanes
    src_oh = (iota_en == src_ref[...]).astype(jnp.float32)              # [Ep, N]
    iota_ne = jax.lax.broadcasted_iota(jnp.int32, (n, e_p), 0)          # node ids on sublanes
    dst_oh = (iota_ne == dst_ref[...]).astype(jnp.float32)              # [N, Ep]
    adj = jnp.dot(dst_oh, src_oh, preferred_element_type=jnp.float32)   # [N, N]: adj[dst, src]

    # ---- add self loops ----
    ri = jax.lax.broadcasted_iota(jnp.int32, (n, n), 0)
    ci = jax.lax.broadcasted_iota(jnp.int32, (n, n), 1)
    adj = adj + (ri == ci).astype(jnp.float32)

    # ---- symmetric normalization, folded as row scalings ----
    # A_hat = D^-1/2 (A+I) D^-1/2   =>   A_hat @ v = d * ((A+I) @ (d * v)),  d = deg^-1/2
    deg = jnp.sum(adj, axis=1, keepdims=True)                            # [N, 1] (>= 1)
    d = jax.lax.rsqrt(deg)                                               # [N, 1]

    # ---- layer 1: relu(A_hat @ X @ W1 + b1), ordered (A_hat @ X) first (F_in < HID) ----
    ax = d * jnp.dot(adj, x_ref[...] * d, preferred_element_type=jnp.float32)   # [N, F_in]
    h1 = jnp.maximum(
        jnp.dot(ax, w1_ref[...], preferred_element_type=jnp.float32) + b1_ref[...],
        0.0)                                                             # [N, HID_P]

    # ---- layer 2: relu(A_hat @ (h1 @ W2) + b2), (h1 @ W2) first (OUT < HID) ----
    hw = jnp.dot(h1, w2_ref[...], preferred_element_type=jnp.float32)    # [N, OUT_P]
    h2 = jnp.maximum(
        d * jnp.dot(adj, hw * d, preferred_element_type=jnp.float32) + b2_ref[...],
        0.0)                                                             # [N, OUT_P]

    # dropout with p=0 (module default) is the identity, so it is omitted.
    # torch.mean(out, dim=0, keepdim=True)
    o_ref[...] = jnp.mean(h2, axis=0, keepdims=True).astype(o_ref.dtype)


# ---------------------------------- wrappers -------------------------------------

def _round_up(v, m):
    return ((v + m - 1) // m) * m


def pad_params(w1, b1, w2, b2):
    """One-time lane-padding of parameters (call at init, NOT per forward)."""
    f_in, hid = w1.shape
    out_d = w2.shape[1]
    hid_p = _round_up(hid, 128)
    out_p = _round_up(out_d, 128)
    w1_p = jnp.pad(w1, ((0, 0), (0, hid_p - hid)))          # [F_in, HID_P]
    b1_p = jnp.pad(b1, ((0, 0), (0, hid_p - hid)))          # [1, HID_P]
    w2_p = jnp.pad(w2, ((0, hid_p - hid), (0, out_p - out_d)))  # [HID_P, OUT_P]
    b2_p = jnp.pad(b2, ((0, 0), (0, out_p - out_d)))         # [1, OUT_P]
    return w1_p, b1_p, w2_p, b2_p


@functools.partial(jax.jit, static_argnames=("out_dim",))
def edge_embedder_forward(x, edge_index, w1_p, b1_p, w2_p, b2_p, *, out_dim):
    """x: [N, F_in] f32, edge_index: [2, E] int32, params pre-padded. Returns [1, out_dim]."""
    n = x.shape[0]
    e = edge_index.shape[1]
    e_p = _round_up(e, 128)
    out_p = w2_p.shape[1]

    # Tiny (few-hundred-byte) per-call prep: pad edges with an out-of-range node id so
    # padded columns match nothing, and orient src/dst so the kernel needs no transposes.
    src = edge_index[0].astype(jnp.int32)
    dst = edge_index[1].astype(jnp.int32)
    src_col = jnp.pad(src, (0, e_p - e), constant_values=n).reshape(e_p, 1)   # [Ep, 1]
    dst_row = jnp.pad(dst, (0, e_p - e), constant_values=n).reshape(1, e_p)   # [1, Ep]

    vmem = pl.BlockSpec(memory_space=pltpu.MemorySpace.VMEM)
    out_padded = pl.pallas_call(
        edge_embedder_kernel,
        out_shape=jax.ShapeDtypeStruct((1, out_p), jnp.float32),
        in_specs=[vmem] * 7,
        out_specs=vmem,
    )(src_col, dst_row, x, w1_p, b1_p, w2_p, b2_p)

    return out_padded[:, :out_dim]            # padded tail columns are exactly zero


# ------------------------------------ main ----------------------------------------

if __name__ == "__main__":
    N, E = 16, 40
    IN_D, HID_D, OUT_D = 50, 200, 100

    key = jax.random.PRNGKey(0)
    k_x, k_e, k_w1, k_w2 = jax.random.split(key, 4)

    x = jax.random.normal(k_x, (N, IN_D), dtype=jnp.float32)
    edge_index = jax.random.randint(k_e, (2, E), 0, N, dtype=jnp.int32)

    def glorot(k, shape):
        limit = (6.0 / (shape[0] + shape[1])) ** 0.5
        return jax.random.uniform(k, shape, jnp.float32, -limit, limit)

    # GCNConv init: glorot weights, zero bias (deterministic, in-script)
    w1 = glorot(k_w1, (IN_D, HID_D))
    b1 = jnp.zeros((1, HID_D), dtype=jnp.float32)
    w2 = glorot(k_w2, (HID_D, OUT_D))
    b2 = jnp.zeros((1, OUT_D), dtype=jnp.float32)

    # one-time parameter padding (hoisted out of the per-call path)
    w1_p, b1_p, w2_p, b2_p = pad_params(w1, b1, w2, b2)

    out = edge_embedder_forward(x, edge_index, w1_p, b1_p, w2_p, b2_p, out_dim=OUT_D)
    out = jax.block_until_ready(out)

    assert out.shape == (1, OUT_D), out.shape
    assert out.dtype == jnp.float32
    print("KERNEL_OK")
</pallas_src>

<mosaic_0001>
module attributes {stable_mosaic.version = 11 : i64} {
  func.func @edge_embedder_kernel(%arg0: memref<128x1xi32, #tpu.memory_space<vmem>>, %arg1: memref<1x128xi32, #tpu.memory_space<vmem>>, %arg2: memref<16x50xf32, #tpu.memory_space<vmem>>, %arg3: memref<50x256xf32, #tpu.memory_space<vmem>>, %arg4: memref<1x256xf32, #tpu.memory_space<vmem>>, %arg5: memref<256x128xf32, #tpu.memory_space<vmem>>, %arg6: memref<1x128xf32, #tpu.memory_space<vmem>>, %arg7: memref<1x128xf32, #tpu.memory_space<vmem>>) attributes {dimension_semantics = [], scalar_prefetch = 0 : i64, scratch_operands = 0 : i64, tpu.core_type = #tpu.core_type<tc>} {
    %0 = tpu.iota {dimensions = array<i32: 1>} : vector<128x16xi32>
    %c0 = arith.constant 0 : index
    %c0_0 = arith.constant 0 : index
    %1 = vector.load %arg0[%c0, %c0_0] : memref<128x1xi32, #tpu.memory_space<vmem>>, vector<128x1xi32>
    %2 = vector.broadcast %1 : vector<128x1xi32> to vector<128x16xi32>
    %3 = arith.cmpi eq, %0, %2 : vector<128x16xi32>
    %4 = arith.extui %3 : vector<128x16xi1> to vector<128x16xi32>
    %5 = arith.sitofp %4 : vector<128x16xi32> to vector<128x16xf32>
    %6 = tpu.iota {dimensions = array<i32: 0>} : vector<16x128xi32>
    %c0_1 = arith.constant 0 : index
    %c0_2 = arith.constant 0 : index
    %7 = vector.load %arg1[%c0_1, %c0_2] : memref<1x128xi32, #tpu.memory_space<vmem>>, vector<1x128xi32>
    %8 = vector.broadcast %7 : vector<1x128xi32> to vector<16x128xi32>
    %9 = arith.cmpi eq, %6, %8 : vector<16x128xi32>
    %10 = arith.extui %9 : vector<16x128xi1> to vector<16x128xi32>
    %11 = arith.sitofp %10 : vector<16x128xi32> to vector<16x128xf32>
    %cst = arith.constant dense<0.000000e+00> : vector<16x16xf32>
    %12 = tpu.matmul %11, %5, %cst {dimension_numbers = #tpu.dot_dimension_numbers<[1], [0], [0], [1], [0, 0, 1, 1], [], []>} : vector<16x128xf32>, vector<128x16xf32>, vector<16x16xf32> -> vector<16x16xf32>
    %13 = tpu.iota {dimensions = array<i32: 0>} : vector<16x16xi32>
    %14 = tpu.iota {dimensions = array<i32: 1>} : vector<16x16xi32>
    %15 = arith.cmpi eq, %13, %14 : vector<16x16xi32>
    %16 = arith.extui %15 : vector<16x16xi1> to vector<16x16xi32>
    %17 = arith.sitofp %16 : vector<16x16xi32> to vector<16x16xf32>
    %18 = arith.addf %12, %17 : vector<16x16xf32>
    %cst_3 = arith.constant dense<0.000000e+00> : vector<16xf32>
    %19 = vector.multi_reduction <add>, %18, %cst_3 [1] : vector<16x16xf32> to vector<16xf32>
    %20 = vector.shape_cast %19 : vector<16xf32> to vector<16x1xf32>
    %21 = math.rsqrt %20 : vector<16x1xf32>
    %c0_4 = arith.constant 0 : index
    %c0_5 = arith.constant 0 : index
    %22 = vector.load %arg2[%c0_4, %c0_5] : memref<16x50xf32, #tpu.memory_space<vmem>>, vector<16x50xf32>
    %23 = vector.broadcast %21 : vector<16x1xf32> to vector<16x50xf32>
    %24 = arith.mulf %22, %23 : vector<16x50xf32>
    %cst_6 = arith.constant dense<0.000000e+00> : vector<16x50xf32>
    %25 = tpu.matmul %18, %24, %cst_6 {dimension_numbers = #tpu.dot_dimension_numbers<[1], [0], [0], [1], [0, 0, 1, 1], [], []>} : vector<16x16xf32>, vector<16x50xf32>, vector<16x50xf32> -> vector<16x50xf32>
    %26 = vector.broadcast %21 : vector<16x1xf32> to vector<16x50xf32>
    %27 = arith.mulf %26, %25 : vector<16x50xf32>
    %c0_7 = arith.constant 0 : index
    %c0_8 = arith.constant 0 : index
    %28 = vector.load %arg3[%c0_7, %c0_8] : memref<50x256xf32, #tpu.memory_space<vmem>>, vector<50x256xf32>
    %cst_9 = arith.constant dense<0.000000e+00> : vector<16x256xf32>
    %29 = tpu.matmul %27, %28, %cst_9 {dimension_numbers = #tpu.dot_dimension_numbers<[1], [0], [0], [1], [0, 0, 1, 1], [], []>} : vector<16x50xf32>, vector<50x256xf32>, vector<16x256xf32> -> vector<16x256xf32>
    %c0_10 = arith.constant 0 : index
    %c0_11 = arith.constant 0 : index
    %30 = vector.load %arg4[%c0_10, %c0_11] : memref<1x256xf32, #tpu.memory_space<vmem>>, vector<1x256xf32>
    %31 = vector.broadcast %30 : vector<1x256xf32> to vector<16x256xf32>
    %32 = arith.addf %29, %31 : vector<16x256xf32>
    %cst_12 = arith.constant 0.000000e+00 : f32
    %33 = vector.broadcast %cst_12 : f32 to vector<16x256xf32>
    %34 = arith.maximumf %32, %33 : vector<16x256xf32>
    %c0_13 = arith.constant 0 : index
    %c0_14 = arith.constant 0 : index
    %35 = vector.load %arg5[%c0_13, %c0_14] : memref<256x128xf32, #tpu.memory_space<vmem>>, vector<256x128xf32>
    %cst_15 = arith.constant dense<0.000000e+00> : vector<16x128xf32>
    %36 = tpu.matmul %34, %35, %cst_15 {dimension_numbers = #tpu.dot_dimension_numbers<[1], [0], [0], [1], [0, 0, 1, 1], [], []>} : vector<16x256xf32>, vector<256x128xf32>, vector<16x128xf32> -> vector<16x128xf32>
    %37 = vector.broadcast %21 : vector<16x1xf32> to vector<16x128xf32>
    %38 = arith.mulf %36, %37 : vector<16x128xf32>
    %cst_16 = arith.constant dense<0.000000e+00> : vector<16x128xf32>
    %39 = tpu.matmul %18, %38, %cst_16 {dimension_numbers = #tpu.dot_dimension_numbers<[1], [0], [0], [1], [0, 0, 1, 1], [], []>} : vector<16x16xf32>, vector<16x128xf32>, vector<16x128xf32> -> vector<16x128xf32>
    %40 = vector.broadcast %21 : vector<16x1xf32> to vector<16x128xf32>
    %41 = arith.mulf %40, %39 : vector<16x128xf32>
    %c0_17 = arith.constant 0 : index
    %c0_18 = arith.constant 0 : index
    %42 = vector.load %arg6[%c0_17, %c0_18] : memref<1x128xf32, #tpu.memory_space<vmem>>, vector<1x128xf32>
    %43 = vector.broadcast %42 : vector<1x128xf32> to vector<16x128xf32>
    %44 = arith.addf %41, %43 : vector<16x128xf32>
    %cst_19 = arith.constant 0.000000e+00 : f32
    %45 = vector.broadcast %cst_19 : f32 to vector<16x128xf32>
    %46 = arith.maximumf %44, %45 : vector<16x128xf32>
    %cst_20 = arith.constant dense<0.000000e+00> : vector<128xf32>
    %47 = vector.multi_reduction <add>, %46, %cst_20 [0] : vector<16x128xf32> to vector<128xf32>
    %48 = vector.shape_cast %47 : vector<128xf32> to vector<1x128xf32>
    %cst_21 = arith.constant 1.600000e+01 : f32
    %49 = vector.broadcast %cst_21 : f32 to vector<1x128xf32>
    %50 = arith.divf %48, %49 : vector<1x128xf32>
    %c0_22 = arith.constant 0 : index
    %c0_23 = arith.constant 0 : index
    %51 = vector.load %arg7[%c0_22, %c0_23] : memref<1x128xf32, #tpu.memory_space<vmem>>, vector<1x128xf32>
    tpu.vector_store %arg7[%c0_22, %c0_23], %50 {strides = array<i32>} : memref<1x128xf32, #tpu.memory_space<vmem>>, vector<1x128xf32>,
    return
  }
}

</mosaic_0001>

<bundles_post_ra>
// kernel: edge_embedder_forward.1
= control target key start
LH: loop header
LB: loop body
LE: loop exit
PB: predicated region body
PF: predicated region fallthrough
CT: control target
= control target key end

     0   :  { %12 = vsyncpa [#allocation3], 0  ;;  %s1235_s0 = inlined_call_operand.vmem [shape: s32[128,1], index: 0, kind: input, shape index: {}]   ;;  %s1236_s1 = inlined_call_operand.vmem [shape: s32[1,128], index: 1, kind: input, shape index: {}]   ;;  %s1237_s2 = inlined_call_operand.vmem [shape: f32[16,50], index: 2, kind: input, shape index: {}]   ;;  %s1238_s3 = inlined_call_operand.vmem [shape: f32[50,256], index: 3, kind: input, shape index: {}]   ;;  %s1239_s4 = inlined_call_operand.vmem [shape: f32[1,256], index: 4, kind: input, shape index: {}]   ;;  %s1240_s5 = inlined_call_operand.hbm [shape: f32[256,128], index: 5, kind: input, shape index: {}]   ;;  %s1241_s6 = inlined_call_operand.vmem [shape: f32[1,128], index: 6, kind: input, shape index: {}]   ;;  %s1242_s7 = inlined_call_operand.hbm [shape: f32[1,128], index: 7, kind: output, shape index: {}]  }
   0x1   :  { %13 = vsyncpa [#allocation4], 0  ;;  %s996_s24 = smov [#allocation2]   ;;  %s948_s28 = scalar_lea.hbm %s1240_s5, 4096 }
   0x2   :  { %s29_s25 = sshll.u32 %s996_s24, 4  ;;  %p949_p0 = scmp.ne.s32.totalorder %s1240_s5, %s948_s28  ;;  %s30_s25 = int_to_ptr.vmem [resolvable:$true] %s29_s25 }
   0x3   :  { %p952_p1 = scmp.lt.u32.totalorder %s948_s28, %s1240_s5 }
   0x5   :  { %p954_p2 = pnand %p952_p1, %p949_p0 }
   0x7   :  { %957 = shalt.err (!%p954_p2)
}
   0x8   :  { %s958_s10 = scalar_lea.vmem %s30_s25, 4096  ;;  %p963_p4 = scmp.lt.s32.totalorder %s30_s25, %s30_s25 }
   0x9   :  { %p959_p3 = scmp.ne.s32.totalorder %s30_s25, %s958_s10  ;;  %p964_p5 = scmp.lt.s32.totalorder %s958_s10, %s958_s10 }
   0xb   :  { %p965_p6 = por %p964_p5, %p963_p4 }
   0xd   :  { %p966_p7 = pnand %p965_p6, %p959_p3 }
   0xf   :  { %969 = shalt.err (!%p966_p7)
}
  0x10   :  { %s997_s11 = smov 128   ;;  %s998_s12 = smov 8  }
  0x11   :  { %35 = dma.hbm_to_vmem [thread:$0]  %s1240_s5, 4096, %s30_s25, [#allocation3], %s997_s11, %s997_s11, %s998_s12  }
  0x12   :  { %992 = dma.done.wait [#allocation3], 4096  }
  0x13   :  { %993 = vsyncadd [#allocation3], 4294963200  ;;  %v999_v0 = vmov 0   ;;  %v45_v1 = vld [vmem:[%s1235_s0 + $0x10] sm:$0xff]  ;;  %v43_v2 = vld [vmem:[%s1235_s0] sm:$0xff]  ;;  %v41_v17 = vlaneseq  ;;  %v1000_v20 = vmov 1.0  }
  0x14   :  { %943 = vset.pattern.permute.xlu1 %v999_v0  ;;  %942 = vset.pattern.permute.xlu0 %v999_v0  ;;  %v46_v3 = vld [vmem:[%s1235_s0 + $0x18] sm:$0xff]  ;;  %v44_v4 = vld [vmem:[%s1235_s0 + $0x8] sm:$0xff]  ;;  %v47_v6 = vld [vmem:[%s1235_s0 + $0x20] sm:$0xff]  ;;  %v1001_v21 = vmov 0.0   ;;  %v1002_v27 = vmov 1.0|1.0  }
  0x15   :  { %66 = vperm.xlu1 %943, %v45_v1   ;;  %60 = vperm.xlu0 %942, %v43_v2   ;;  %v48_v5 = vld [vmem:[%s1235_s0 + $0x28] sm:$0xff]  ;;  %v50_v7 = vld [vmem:[%s1235_s0 + $0x38] sm:$0xff]  ;;  %v49_v8 = vld [vmem:[%s1235_s0 + $0x30] sm:$0xff]  ;;  %v1104_v18 = vshrl.u32 %v41_v17, 7  ;;  %v1115_v24 = vand.u32 127, %v41_v17  ;;  %s1003_s29 = smov [#allocation5]  }
  0x16   :  { %v52_v9 = vld [vmem:[%s1235_s0 + $0x48] sm:$0xff]  ;;  %v51_v10 = vld [vmem:[%s1235_s0 + $0x40] sm:$0xff]  ;;  %v54_v11 = vld [vmem:[%s1235_s0 + $0x58] sm:$0xff]  ;;  %450 = vmatprep.mubr.f32.mxu1 %v1001_v21  ;;  %s680_s30 = sshll.u32 %s1003_s29, 4  ;;  %s681_s30 = int_to_ptr.vmem [resolvable:$true] %s680_s30 }
  0x17   :  { %v53_v12 = vld [vmem:[%s1235_s0 + $0x50] sm:$0xff]  ;;  %v56_v13 = vld [vmem:[%s1235_s0 + $0x68] sm:$0xff]  ;;  %v55_v14 = vld [vmem:[%s1235_s0 + $0x60] sm:$0xff]  ;;  %v157_v40 = vadd.s32 8, %v1104_v18  ;;  %s974_s8 = scalar_lea.vmem %s681_s30, 32  ;;  %p975_p9 = scmp.lt.s32.totalorder %s681_s30, %s681_s30 }
  0x18   :  { %v58_v15 = vld [vmem:[%s1235_s0 + $0x78] sm:$0xff]  ;;  %v57_v16 = vld [vmem:[%s1235_s0 + $0x70] sm:$0xff]  ;;  %v1109_v19 = vld [vmem:[%s1236_s1] ss:$0 sm:$0xff] }
  0x19   :  { %69 = vperm.xlu1 %943, %v46_v3   ;;  %63 = vperm.xlu0 %942, %v44_v4   ;;  %vm163_vm0 = vcmp.eq.s32.totalorder %v1104_v18, %v1109_v19  ;;  %v347_v49 = vld [vmem:[%s1238_s3 + $0x8] sm:$0xff]  ;;  %v349_v50 = vld [vmem:[%s1238_s3 + $0x18] sm:$0xff]  ;;  %v346_v51 = vld [vmem:[%s1238_s3] sm:$0xff] }
  0x1a   :  { %833 = vmatprep.mubr.msk.f32.mxu0 %vm163_vm0, %v1000_v20  ;;  %v886_v52 = vpack.c.bf16 %v349_v50, %v347_v49  ;;  %v348_v53 = vld [vmem:[%s1238_s3 + $0x10] sm:$0xff]  ;;  %v351_v54 = vld [vmem:[%s1238_s3 + $0x28] sm:$0xff]  ;;  %v353_v55 = vld [vmem:[%s1238_s3 + $0x38] sm:$0xff] }
  0x1b   :  { %v888_v56 = vpack.c.bf16 %v348_v53, %v346_v51  ;;  %v890_v57 = vpack.c.bf16 %v353_v55, %v351_v54  ;;  %v350_v58 = vld [vmem:[%s1238_s3 + $0x20] sm:$0xff]  ;;  %v352_v59 = vld [vmem:[%s1238_s3 + $0x30] sm:$0xff]  ;;  %v355_v60 = vld [vmem:[%s1238_s3 + $0x48] sm:$0xff] }
  0x1c   :  { %887 = vmatprep.subr.bf16.mxu1 %v886_v52  ;;  %v357_v61 = vld [vmem:[%s1238_s3 + $0x58] sm:$0xff]  ;;  %v892_v62 = vpack.c.bf16 %v352_v59, %v350_v58  ;;  %v354_v0 = vld [vmem:[%s1238_s3 + $0x40] sm:$0xff]  ;;  %v356_v1 = vld [vmem:[%s1238_s3 + $0x50] sm:$0xff] }
  0x1d   :  { %75 = vperm.xlu1 %943, %v48_v5   ;;  %72 = vperm.xlu0 %942, %v47_v6   ;;  %v894_v63 = vpack.c.bf16 %v357_v61, %v355_v60  ;;  %v896_v2 = vpack.c.bf16 %v356_v1, %v354_v0  ;;  %v260_v5 = vld [vmem:[%s1237_s2 + $0x8] sm:$0xff]  ;;  %v259_v6 = vld [vmem:[%s1237_s2] sm:$0xff]  ;;  %v493_v49 = vld [vmem:[#allocation2 + $0xd0] sm:$0xff] }
  0x1e   :  { %889 = vmatpush1.bf16.msra.mxu1 %v888_v56  ;;  %v467_v17 = vld [vmem:[#allocation2] sm:$0xff]  ;;  %v494_v50 = vld [vmem:[#allocation2 + $0xd8] sm:$0xff]  ;;  %v477_v53 = vld [vmem:[#allocation2 + $0x50] sm:$0xff] }
  0x1f   :  { %891 = vmatprep.subr.bf16.mxu1 %v890_v57  ;;  %v918_v52 = vpack.c.bf16 %v494_v50, %v493_v49  ;;  %v478_v54 = vld [vmem:[#allocation2 + $0x58] sm:$0xff]  ;;  %v495_v55 = vld [vmem:[#allocation2 + $0xe0] sm:$0xff]  ;;  %v496_v56 = vld [vmem:[#allocation2 + $0xe8] sm:$0xff] }
  0x20   :  { %v920_v57 = vpack.c.bf16 %v478_v54, %v477_v53  ;;  %v922_v58 = vpack.c.bf16 %v496_v56, %v495_v55  ;;  %v479_v59 = vld [vmem:[#allocation2 + $0x60] sm:$0xff]  ;;  %v480_v60 = vld [vmem:[#allocation2 + $0x68] sm:$0xff]  ;;  %v481_v1 = vld [vmem:[#allocation2 + $0x70] sm:$0xff] }
  0x21   :  { %81 = vperm.xlu1 %943, %v50_v7   ;;  %78 = vperm.xlu0 %942, %v49_v8   ;;  %v924_v61 = vpack.c.bf16 %v480_v60, %v479_v59 }
  0x22   :  { %893 = vmatpush1.bf16.msra.mxu1 %v892_v62  ;;  %v497_v62 = vld [vmem:[#allocation2 + $0xf0] sm:$0xff] }
  0x23   :  { %895 = vmatprep.subr.bf16.mxu1 %v894_v63  ;;  %v498_v63 = vld [vmem:[#allocation2 + $0xf8] sm:$0xff] }
  0x24   :  { %v926_v0 = vpack.c.bf16 %v498_v63, %v497_v62 }
  0x25   :  { %87 = vperm.xlu1 %943, %v52_v9   ;;  %84 = vperm.xlu0 %942, %v51_v10  }
  0x26   :  { %897 = vmatpush1.bf16.msra.mxu1 %v896_v2  ;;  %v482_v2 = vld [vmem:[#allocation2 + $0x78] sm:$0xff] }
  0x29   :  { %93 = vperm.xlu1 %943, %v54_v11   ;;  %90 = vperm.xlu0 %942, %v53_v12   ;;  %v359_v12 = vld [vmem:[%s1238_s3 + $0x68] sm:$0x3] }
  0x2d   :  { %99 = vperm.xlu1 %943, %v56_v13   ;;  %96 = vperm.xlu0 %942, %v55_v14   ;;  %v358_v13 = vld [vmem:[%s1238_s3 + $0x60] sm:$0x3] }
  0x2e   :  { %v483_v14 = vld [vmem:[#allocation2 + $0x80] sm:$0xff] }
  0x31   :  { %105 = vperm.xlu1 %943, %v58_v15   ;;  %102 = vperm.xlu0 %942, %v57_v16   ;;  %v484_v15 = vld [vmem:[#allocation2 + $0x88] sm:$0xff] }
  0x32   :  { %v898_v16 = vpack.c.bf16 %v484_v15, %v483_v14 }
  0x94   :  { %v67_v22 = vpop.permute.xlu1 %66  ;;  %v61_v23 = vpop.permute.xlu0 %60 }
  0x95   :  { %vm109_vm2 = vcmp.eq.s32.totalorder %v1115_v24, %v67_v22  ;;  %vm107_vm3 = vcmp.eq.s32.totalorder %v1115_v24, %v61_v23  ;;  %v486_v22 = vld [vmem:[#allocation2 + $0x98] sm:$0xff] }
  0x98   :  { %v70_v25 = vpop.permute.xlu1 %69  ;;  %v64_v26 = vpop.permute.xlu0 %63 }
  0x99   :  { %vm108_vm1 = vcmp.eq.s32.totalorder %v1115_v24, %v64_v26  ;;  %vm110_vm4 = vcmp.eq.s32.totalorder %v1115_v24, %v70_v25 }
  0x9a   :  { %vm850_vm5 = vmpackc.low %vm108_vm1, %vm107_vm3 }
  0x9b   :  { %851 = vmatprep.subr.msk.bf16.mxu0 %vm850_vm5, %v1002_v27  ;;  %vm854_vm6 = vmpackc.low %vm110_vm4, %vm109_vm2 }
  0x9c   :  { %v76_v28 = vpop.permute.xlu1 %75  ;;  %v73_v29 = vpop.permute.xlu0 %72  ;;  %853 = vmatpush3.bf16.msk.msra.mxu0 %vm850_vm5, %v1002_v27 }
  0x9d   :  { %vm112_vm7 = vcmp.eq.s32.totalorder %v1115_v24, %v76_v28  ;;  %vm111_vm8 = vcmp.eq.s32.totalorder %v1115_v24, %v73_v29  ;;  %855 = vmatprep.subr.msk.bf16.mxu0 %vm854_vm6, %v1002_v27  ;;  %v469_v28 = vld [vmem:[#allocation2 + $0x10] sm:$0xff]  ;;  %v470_v29 = vld [vmem:[#allocation2 + $0x18] sm:$0xff] }
  0x9e   :  { %vm858_vm9 = vmpackc.low %vm112_vm7, %vm111_vm8 }
  0xa0   :  { %v82_v30 = vpop.permute.xlu1 %81  ;;  %v79_v31 = vpop.permute.xlu0 %78  ;;  %857 = vmatpush3.bf16.msk.msra.mxu0 %vm854_vm6, %v1002_v27 }
  0xa1   :  { %vm114_vm10 = vcmp.eq.s32.totalorder %v1115_v24, %v82_v30  ;;  %vm113_vm11 = vcmp.eq.s32.totalorder %v1115_v24, %v79_v31  ;;  %859 = vmatprep.subr.msk.bf16.mxu0 %vm858_vm9, %v1002_v27  ;;  %v487_v30 = vld [vmem:[#allocation2 + $0xa0] sm:$0xff]  ;;  %v488_v31 = vld [vmem:[#allocation2 + $0xa8] sm:$0xff] }
  0xa2   :  { %vm862_vm12 = vmpackc.low %vm114_vm10, %vm113_vm11  ;;  %vm170_vm10 = vcmp.eq.s32.totalorder %v157_v40, %v1115_v24  ;;  %vm169_vm11 = vcmp.eq.s32.totalorder %v1104_v18, %v1115_v24 }
  0xa3   :  { %v709_v41 = vsel %vm170_vm10, 1.0, %v1001_v21  ;;  %v708_v42 = vsel %vm169_vm11, 1.0, %v1001_v21 }
  0xa4   :  { %v88_v32 = vpop.permute.xlu1 %87  ;;  %v85_v33 = vpop.permute.xlu0 %84  ;;  %861 = vmatpush3.bf16.msk.msra.mxu0 %vm858_vm9, %v1002_v27  ;;  %vm164_vm9 = vcmp.eq.s32.totalorder %v157_v40, %v1109_v19  ;;  %v468_v19 = vld [vmem:[#allocation2 + $0x8] sm:$0xff] }
  0xa5   :  { %vm116_vm13 = vcmp.eq.s32.totalorder %v1115_v24, %v88_v32  ;;  %vm115_vm14 = vcmp.eq.s32.totalorder %v1115_v24, %v85_v33  ;;  %863 = vmatprep.subr.msk.bf16.mxu0 %vm862_vm12, %v1002_v27  ;;  %v900_v25 = vpack.c.bf16 %v468_v19, %v467_v17  ;;  %v904_v32 = vpack.c.bf16 %v470_v29, %v469_v28 }
  0xa6   :  { %vm866_vm15 = vmpackc.low %vm116_vm13, %vm115_vm14  ;;  %vm379_vm13 = vcmask 1041408   ;;  %vm372_vm14 = vcmask 408576  }
  0xa7   :  { %730 = vmatprep.subr.msk.mxu1 %vm379_vm13, %v359_v12 }
  0xa8   :  { %v94_v34 = vpop.permute.xlu1 %93  ;;  %v91_v35 = vpop.permute.xlu0 %90  ;;  %865 = vmatpush3.bf16.msk.msra.mxu0 %vm862_vm12, %v1002_v27  ;;  %vm250_vm12 = vcmask 130048   ;;  %731 = vmatpush1.msk.msra.mxu1 %vm379_vm13, %v358_v13 }
  0xa9   :  { %vm118_vm0 = vcmp.eq.s32.totalorder %v1115_v24, %v94_v34  ;;  %vm117_vm1 = vcmp.eq.s32.totalorder %v1115_v24, %v91_v35  ;;  %867 = vmatprep.subr.msk.bf16.mxu0 %vm866_vm15, %v1002_v27  ;;  %899 = vmatprep.subr.bf16.mxu1 %v898_v16  ;;  %v906_v34 = vpack.c.bf16 %v488_v31, %v487_v30  ;;  %v471_v35 = vld [vmem:[#allocation2 + $0x20] sm:$0xff] }
  0xaa   :  { %vm870_vm2 = vmpackc.low %vm118_vm0, %vm117_vm1 }
  0xac   :  { %v100_v36 = vpop.permute.xlu1 %99  ;;  %v97_v37 = vpop.permute.xlu0 %96  ;;  %869 = vmatpush3.bf16.msk.msra.mxu0 %vm866_vm15, %v1002_v27 }
  0xad   :  { %vm120_vm3 = vcmp.eq.s32.totalorder %v1115_v24, %v100_v36  ;;  %vm119_vm4 = vcmp.eq.s32.totalorder %v1115_v24, %v97_v37  ;;  %871 = vmatprep.subr.msk.bf16.mxu0 %vm870_vm2, %v1002_v27  ;;  %v472_v36 = vld [vmem:[#allocation2 + $0x28] sm:$0xff]  ;;  %v489_v37 = vld [vmem:[#allocation2 + $0xb0] sm:$0xff] }
  0xae   :  { %vm874_vm5 = vmpackc.low %vm120_vm3, %vm119_vm4 }
  0xb0   :  { %v106_v38 = vpop.permute.xlu1 %105  ;;  %v103_v39 = vpop.permute.xlu0 %102  ;;  %873 = vmatpush3.bf16.msk.msra.mxu0 %vm870_vm2, %v1002_v27 }
  0xb1   :  { %vm122_vm6 = vcmp.eq.s32.totalorder %v1115_v24, %v106_v38  ;;  %vm121_vm7 = vcmp.eq.s32.totalorder %v1115_v24, %v103_v39  ;;  %875 = vmatprep.subr.msk.bf16.mxu0 %vm874_vm5, %v1002_v27  ;;  %v490_v38 = vld [vmem:[#allocation2 + $0xb8] sm:$0xff]  ;;  %v908_v39 = vpack.c.bf16 %v472_v36, %v471_v35 }
  0xb2   :  { %vm878_vm8 = vmpackc.low %vm122_vm6, %vm121_vm7  ;;  %v910_v40 = vpack.c.bf16 %v490_v38, %v489_v37 }
  0xb4   :  { %877 = vmatpush3.bf16.msk.msra.mxu0 %vm874_vm5, %v1002_v27 }
  0xb5   :  { %879 = vmatprep.subr.msk.bf16.mxu0 %vm878_vm8, %v1002_v27 }
  0xb8   :  { %881 = vmatpush3.bf16.msk.msra.mxu0 %vm878_vm8, %v1002_v27 }
  0xbb   :  { %834 = vmatmul.mubr.msk.f32.vlgmr.msra.gmra.mrb[0].mxu0 %vm164_vm9, %v1000_v20  ;;  %v485_v20 = vld [vmem:[#allocation2 + $0x90] sm:$0xff] }
  0xbc   :  { %v902_v27 = vpack.c.bf16 %v486_v22, %v485_v20 }
 0x18e   :  { %v835_v43 = vpop.f32.mrb[0].mxu0 }
 0x18f   :  { %v1141_v44 = vadd.f32 %v835_v43, %v709_v41  ;;  %v241_v45 = vpop.f32.mrb[1].mxu0  ;;  %v473_v41 = vld [vmem:[#allocation2 + $0x30] sm:$0xff]  ;;  %v491_v43 = vld [vmem:[#allocation2 + $0xc0] sm:$0xff] }
 0x190   :  { %v242_v46 = vadd.f32 %v708_v42, %v241_v45  ;;  %v474_v42 = vld [vmem:[#allocation2 + $0x38] sm:$0xff] }
 0x191   :  { %v254_v47 = vsel %vm250_vm12, %v1141_v44, 0.0  ;;  %v912_v45 = vpack.c.bf16 %v474_v42, %v473_v41 }
 0x192   :  { %255 = vadd.xlane.f32.xlu1 %v254_v47  ;;  %840 = vmatprep.mubr.msk.f32.mxu0 %vm250_vm12, %v242_v46  ;;  %v251_v48 = vsel %vm250_vm12, %v242_v46, 0.0  ;;  %v475_v47 = vld [vmem:[#allocation2 + $0x40] sm:$0xff] }
 0x193   :  { %252 = vadd.xlane.f32.xlu0 %v251_v48  ;;  %v476_v48 = vld [vmem:[#allocation2 + $0x48] sm:$0xff] }
 0x194   :  { %v916_v51 = vpack.c.bf16 %v476_v48, %v475_v47 }
 0x21f   :  { %v256_v3 = vpop.xlane.xlu1 %255 }
 0x220   :  { %944 = vrsqrt.f32 %v256_v3  ;;  %v253_v4 = vpop.xlane.xlu0 %252  ;;  %v928_v3 = vpack.c.bf16 %v482_v2, %v481_v1 }
 0x221   :  { %946 = vrsqrt.f32 %v253_v4  ;;  %v364_v4 = vsub.s32 0, %v1104_v18 }
 0x22a   :  { %v1189_v7 = vpop.eup %944 }
 0x22b   :  { %v1191_v8 = vpop.eup %946  ;;  %v262_v9 = vmul.f32 %v1189_v7, %v260_v5  ;;  %v360_v5 = vld [vmem:[%s1239_s4] sm:$0x3] }
 0x22c   :  { %v261_v10 = vmul.f32 %v1191_v8, %v259_v6  ;;  %v368_v6 = vsub.s32 1, %v1104_v18 }
 0x22e   :  { %v882_v11 = vpack.c.bf16 %v262_v9, %v261_v10  ;;  %v365_v9 = vrot.slane %v360_v5, %v364_v4  ;;  %v369_v10 = vrot.slane %v360_v5, %v368_v6 }
 0x230   :  { %883 = vmatprep.subr.bf16.mxu0 %v882_v11 }
 0x231   :  { %885 = vmatpush3.bf16.msra.mxu0 %v882_v11 }
 0x234   :  { %841 = vmatmul.mubr.msk.f32.vlgmr.msra.gmra.mrb[2].mxu0 %vm250_vm12, %v1141_v44 }
 0x235   :  { %847 = vmatprep.mubr.msk.f32.mxu0 %vm250_vm12, %v242_v46 }
 0x307   :  { %v842_v23 = vpop.f32.mrb[2].mxu0 }
 0x308   :  { %v335_v24 = vpop.f32.mrb[3].mxu0  ;;  %v345_v33 = vmul.f32 %v1189_v7, %v842_v23 }
 0x309   :  { %v344_v26 = vmul.f32 %v1191_v8, %v335_v24 }
 0x30b   :  { %732 = vmatmul.mubr.msk.f32.vlgmr.msra.gmra.mrb[0].mxu1 %vm372_vm14, %v344_v26 }
 0x30c   :  { %456 = vmatprep.mubr.f32.mxu1 %v1001_v21  ;;  %901 = vmatpush3.bf16.msra.mxu1 %v900_v25  ;;  %v492_v21 = vld [vmem:[#allocation2 + $0xc8] sm:$0xff] }
 0x30d   :  { %903 = vmatprep.subr.bf16.mxu1 %v902_v27  ;;  %v914_v46 = vpack.c.bf16 %v492_v21, %v491_v43 }
 0x30f   :  { %733 = vmatmul.mubr.msk.f32.gmra.mrb[2].mxu1 %vm372_vm14, %v345_v33 }
 0x310   :  { %905 = vmatpush3.bf16.msra.mxu1 %v904_v32 }
 0x311   :  { %907 = vmatprep.subr.bf16.mxu1 %v906_v34  ;;  %v736_v34 = vld [vmem:[%s1241_s6] ss:$0 sm:$0xff]  ;;  %s970_s6 = scalar_lea.vmem %s681_s30, 16 }
 0x312   :  { %p971_p8 = scmp.ne.s32.totalorder %s681_s30, %s970_s6  ;;  %p976_p10 = scmp.lt.s32.totalorder %s974_s8, %s970_s6 }
 0x314   :  { %909 = vmatpush3.bf16.msra.mxu1 %v908_v39  ;;  %p977_p11 = por %p976_p10, %p975_p9 }
 0x315   :  { %911 = vmatprep.subr.bf16.mxu1 %v910_v40 }
 0x316   :  { %p978_p12 = pnand %p977_p11, %p971_p8 }
 0x318   :  { %913 = vmatpush3.bf16.msra.mxu1 %v912_v45 }
 0x319   :  { %915 = vmatprep.subr.bf16.mxu1 %v914_v46 }
 0x31c   :  { %917 = vmatpush3.bf16.msra.mxu1 %v916_v51 }
 0x31d   :  { %919 = vmatprep.subr.bf16.mxu1 %v918_v52 }
 0x320   :  { %921 = vmatpush3.bf16.msra.mxu1 %v920_v57 }
 0x321   :  { %923 = vmatprep.subr.bf16.mxu1 %v922_v58 }
 0x324   :  { %925 = vmatpush3.bf16.msra.mxu1 %v924_v61 }
 0x325   :  { %927 = vmatprep.subr.bf16.mxu1 %v926_v0 }
 0x328   :  { %929 = vmatpush3.bf16.msra.mxu1 %v928_v3 }
 0x3de   :  { %v452_v11 = vpop.f32.mrb[0].mxu1 }
 0x3df   :  { %v453_v12 = vadd.f32 %v452_v11, %v365_v9  ;;  %v454_v13 = vpop.f32.mrb[1].mxu1 }
 0x3e0   :  { %v455_v14 = vadd.f32 %v454_v13, %v369_v10 }
 0x3e1   :  { %v463_v17 = vmax.f32 %v453_v12, 0.0 }
 0x3e2   :  { %v464_v15 = vmax.f32 %v455_v14, 0.0  ;;  %v458_v16 = vpop.f32.mrb[2].mxu1 }
 0x3e3   :  { %v459_v19 = vadd.f32 %v458_v16, %v365_v9  ;;  %v460_v20 = vpop.f32.mrb[3].mxu1 }
 0x3e4   :  { %v461_v22 = vadd.f32 %v460_v20, %v369_v10  ;;  %563 = vmatprep.mubr.f32.mxu1 %v464_v15 }
 0x3e5   :  { %564 = vmatmul.mubr.f32.vlgmr.msra.gmra.mrb[4].mxu1 %v463_v17  ;;  %v465_v24 = vmax.f32 %v459_v19, 0.0 }
 0x3e6   :  { %v466_v23 = vmax.f32 %v461_v22, 0.0 }
 0x3e8   :  { %568 = vmatprep.mubr.f32.mxu1 %v466_v23 }
 0x3e9   :  { %569 = vmatmul.mubr.f32.gmra.mrb[6].mxu1 %v465_v24 }
 0x4b8   :  { %v791_v25 = vpop.f32.mrb[4].mxu1 }
 0x4b9   :  { %v792_v18 = vpop.f32.mrb[5].mxu1 }
 0x4ba   :  { %v793_v26 = vadd.f32 %v792_v18, %v791_v25 }
 0x4bc   :  { %v794_v27 = vpop.f32.mrb[6].mxu1  ;;  %v574_v30 = vmul.f32 %v1191_v8, %v793_v26 }
 0x4bd   :  { %v795_v28 = vpop.f32.mrb[7].mxu1 }
 0x4be   :  { %v796_v29 = vadd.f32 %v795_v28, %v794_v27 }
 0x4c0   :  { %v575_v31 = vmul.f32 %v1189_v7, %v796_v29 }
 0x4c2   :  { %v930_v32 = vpack.c.bf16 %v575_v31, %v574_v30 }
 0x4c4   :  { %931 = vmatprep.subr.bf16.mxu0 %v930_v32 }
 0x4c5   :  { %933 = vmatpush3.bf16.msra.mxu0 %v930_v32 }
 0x4c8   :  { %848 = vmatmul.mubr.msk.f32.vlgmr.msra.gmra.mrb[4].mxu0 %vm250_vm12, %v1141_v44 }
 0x59b   :  { %v849_v33 = vpop.f32.mrb[4].mxu0 }
 0x59c   :  { %v652_v35 = vmul.f32 %v1189_v7, %v849_v33  ;;  %v642_v36 = vpop.f32.mrb[5].mxu0 }
 0x59d   :  { %v651_v37 = vmul.f32 %v1191_v8, %v642_v36 }
 0x59e   :  { %v661_v38 = vadd.f32 %v736_v34, %v652_v35 }
 0x59f   :  { %v660_v39 = vadd.f32 %v736_v34, %v651_v37 }
 0x5a0   :  { %v663_v40 = vmax.f32 %v661_v38, 0.0 }
 0x5a1   :  { %v662_v41 = vmax.f32 %v660_v39, 0.0 }
 0x5a3   :  { %v664_v42 = vadd.f32 %v663_v40, %v662_v41 }
 0x5a5   :  { %v665_v43 = vrot.slane %v664_v42, 4 }
 0x5a7   :  { %v666_v21 = vadd.f32 %v665_v43, %v664_v42 }
 0x5a9   :  { %v667_v45 = vrot.slane %v666_v21, 2 }
 0x5ab   :  { %v668_v46 = vadd.f32 %v667_v45, %v666_v21 }
 0x5ad   :  { %v669_v44 = vrot.slane %v668_v46, 1 }
 0x5af   :  { %v670_v47 = vadd.f32 %v669_v44, %v668_v46 }
 0x5b1   :  { %v672_v48 = vmul.f32 0.0625, %v670_v47 }
 0x5b3   :  { %673 = vst [vmem:[#allocation5] sm:$0x1] %v672_v48 }
 0x5b4   :  { %981 = shalt.err (!%p978_p12)
}
 0x5b5   :  { %s982_s11 = scalar_lea.hbm %s1242_s7, 16 }
 0x5b6   :  { %p983_p13 = scmp.ne.s32.totalorder %s1242_s7, %s982_s11  ;;  %p986_p0 = scmp.lt.u32.totalorder %s982_s11, %s1242_s7 }
 0x5b8   :  { %p988_p1 = pnand %p986_p0, %p983_p13 }
 0x5ba   :  { %991 = shalt.err (!%p988_p1)
}
 0x5bb   :  { %683 = dma.vmem_to_hbm [thread:$0]  %s681_s30, 16, %s1242_s7, [#allocation4]  }
 0x5bc   :  { %994 = dma.done.wait [#allocation4], 16  }
 0x5bd   :  { %995 = vsyncadd [#allocation4], 4294967280 }
 0x5be   :  { %687 = vsyncpa [#allocation3], 1 }
 0x5bf   :  { %688 = vsyncpa [#allocation4], 1 }

</bundles_post_ra>
